<compile_context>
chip_gen: v7x
topology: tpu7x:2x2x1
jax: 0.10.0
libtpu: 0.0.40
codegen_flags: <defaults>
</compile_context>

<pallas_src>
import functools

import jax
import jax.numpy as jnp
from jax import lax
from jax.experimental import pallas as pl
from jax.experimental.pallas import tpu as pltpu

GROWTH = 32
BLOCK_CONFIG = (6, 12, 24, 16)
NUM_INIT_FEATURES = 64
BN_SIZE = 4
NUM_CLASSES = 14
BN_EPS = 1e-5


def _round_up(x, m):
    return (x + m - 1) // m * m


# --------------------------------------------------------------------------
# Fused matmul Pallas kernel:   out = epilogue( prologue(A) @ B )
#   prologue (optional): per-K-channel  relu(A * in_scale + in_shift)
#   epilogue (optional): per-N-channel  [relu](acc * out_scale + out_shift)
# A is cast to bf16 for the MXU; accumulation is f32 in a tile-sized scratch.
# --------------------------------------------------------------------------

def _fused_matmul_kernel(a_ref, b_ref, isc_ref, ish_ref, osc_ref, osh_ref,
                         o_ref, acc_ref, *, in_fuse, in_relu, out_fuse,
                         out_relu):
    k = pl.program_id(2)

    @pl.when(k == 0)
    def _():
        acc_ref[...] = jnp.zeros_like(acc_ref)

    a = a_ref[...]
    if in_fuse:
        a = a.astype(jnp.float32) * isc_ref[...] + ish_ref[...]
        if in_relu:
            a = jnp.maximum(a, 0.0)
    a = a.astype(jnp.bfloat16)
    acc_ref[...] += jnp.dot(a, b_ref[...], preferred_element_type=jnp.float32)

    @pl.when(k == pl.num_programs(2) - 1)
    def _():
        y = acc_ref[...]
        if out_fuse:
            y = y * osc_ref[...] + osh_ref[...]
            if out_relu:
                y = jnp.maximum(y, 0.0)
        o_ref[...] = y.astype(o_ref.dtype)


def _pick_k_tile(Kp):
    for c in (512, 384, 256, 128):
        if c <= Kp and Kp % c == 0:
            return c
    return 128


def fused_matmul(a, b_padded, n_valid, *, in_scale=None, in_shift=None,
                 in_relu=False, out_scale=None, out_shift=None,
                 out_relu=False, out_dtype=jnp.bfloat16):
    """a: (M, K).  b_padded: (Kp, Np) bf16 pre-padded.  Returns (M, n_valid)."""
    M, K = a.shape
    Kp, Np = b_padded.shape
    assert K <= Kp and n_valid <= Np

    # Tile sizes sized well under scoped VMEM on every generation (v5e/v6e/v7x).
    if M >= 256:
        tm, Mp = 256, _round_up(M, 256)
    else:
        Mp = _round_up(max(M, 16), 16)
        tm = Mp
    tn = 256 if Np % 256 == 0 else 128
    tk = _pick_k_tile(Kp)

    a_p = jnp.zeros((Mp, Kp), a.dtype).at[:M, :K].set(a)

    in_fuse = in_scale is not None
    out_fuse = out_scale is not None
    if not in_fuse:
        in_scale = jnp.zeros((1, Kp), jnp.float32)
        in_shift = in_scale
    if not out_fuse:
        out_scale = jnp.zeros((1, Np), jnp.float32)
        out_shift = out_scale

    kernel = functools.partial(_fused_matmul_kernel, in_fuse=in_fuse,
                               in_relu=in_relu, out_fuse=out_fuse,
                               out_relu=out_relu)
    out = pl.pallas_call(
        kernel,
        out_shape=jax.ShapeDtypeStruct((Mp, Np), out_dtype),
        grid_spec=pltpu.PrefetchScalarGridSpec(
            num_scalar_prefetch=0,
            grid=(Mp // tm, Np // tn, Kp // tk),
            in_specs=[pl.BlockSpec((tm, tk), lambda i, j, k: (i, k)),
                      pl.BlockSpec((tk, tn), lambda i, j, k: (k, j)),
                      pl.BlockSpec((1, tk), lambda i, j, k: (0, k)),
                      pl.BlockSpec((1, tk), lambda i, j, k: (0, k)),
                      pl.BlockSpec((1, tn), lambda i, j, k: (0, j)),
                      pl.BlockSpec((1, tn), lambda i, j, k: (0, j))],
            out_specs=pl.BlockSpec((tm, tn), lambda i, j, k: (i, j)),
            scratch_shapes=[pltpu.VMEM((tm, tn), jnp.float32)]),
        compiler_params=pltpu.CompilerParams(
            dimension_semantics=("parallel", "parallel", "arbitrary"),
            vmem_limit_bytes=32 * 1024 * 1024),
    )(a_p, b_padded, in_scale, in_shift, out_scale, out_shift)
    return out[:M, :n_valid]


# --------------------------------------------------------------------------
# Global average pool fused with norm5 + ReLU
# --------------------------------------------------------------------------

def _gap_bn_relu_kernel(x_ref, s_ref, b_ref, o_ref):
    x = x_ref[...].astype(jnp.float32)
    y = jnp.maximum(x * s_ref[...] + b_ref[...], 0.0)
    o_ref[...] = jnp.mean(y, axis=1)


def pallas_gap_bn_relu(x3d, scale, shift, c_valid):
    """x3d: (N, HW, Cp).  scale/shift: (1, 1, Cp).  -> (N, c_valid) f32."""
    n, hw, cp = x3d.shape
    n_p = _round_up(max(n, 8), 8)
    x_p = jnp.zeros((n_p, hw, cp), x3d.dtype).at[:n].set(x3d)
    out = pl.pallas_call(
        _gap_bn_relu_kernel,
        out_shape=jax.ShapeDtypeStruct((n_p, cp), jnp.float32),
        grid=(1,),
        in_specs=[pl.BlockSpec((n_p, hw, cp), lambda i: (0, 0, 0)),
                  pl.BlockSpec((1, 1, cp), lambda i: (0, 0, 0)),
                  pl.BlockSpec((1, 1, cp), lambda i: (0, 0, 0))],
        out_specs=pl.BlockSpec((n_p, cp), lambda i: (0, 0)),
    )(x_p, scale, shift)
    return out[:n, :c_valid]


# --------------------------------------------------------------------------
# Layers (glue = reshapes / slicing / pooling windows only)
# --------------------------------------------------------------------------

def conv2d_fused(x_nhwc, conv, *, stride=1, padding=0, in_aff=None,
                 in_relu=False, out_aff=None, out_relu=False):
    """Conv (no bias) with BN+ReLU fused into the matmul prologue/epilogue."""
    kh, kw, cin, cout = conv['kh'], conv['kw'], conv['cin'], conv['cout']
    n, h, w, c = x_nhwc.shape
    assert c == cin
    if padding:
        x_nhwc = jnp.pad(
            x_nhwc, ((0, 0), (padding, padding), (padding, padding), (0, 0)))
    hp, wp = h + 2 * padding, w + 2 * padding
    oh = (hp - kh) // stride + 1
    ow = (wp - kw) // stride + 1
    if kh == 1 and kw == 1 and stride == 1:
        cols = x_nhwc.reshape(n * oh * ow, cin)
    else:
        # TODO(synk): im2col is still materialized in HBM; a shifted-window
        # BlockSpec formulation (9 accumulated 1x1 matmuls) would remove the
        # 9x copy for the 3x3 convs at full 224x224 resolution.
        patches = []
        for i in range(kh):
            for j in range(kw):
                patches.append(
                    x_nhwc[:, i:i + stride * (oh - 1) + 1:stride,
                           j:j + stride * (ow - 1) + 1:stride, :])
        cols = jnp.concatenate(patches, axis=-1).reshape(
            n * oh * ow, kh * kw * cin)
    isc, ish = in_aff if in_aff is not None else (None, None)
    osc, osh = out_aff if out_aff is not None else (None, None)
    out = fused_matmul(cols, conv['w'], cout,
                       in_scale=isc, in_shift=ish, in_relu=in_relu,
                       out_scale=osc, out_shift=osh, out_relu=out_relu,
                       out_dtype=jnp.bfloat16)
    return out.reshape(n, oh, ow, cout)


def max_pool_3x3_s2_p1(x_nhwc):
    # TODO(synk): windowed max-pool kept in plain JAX (lax.reduce_window).
    y = lax.reduce_window(x_nhwc.astype(jnp.float32), -jnp.inf, lax.max,
                          window_dimensions=(1, 3, 3, 1),
                          window_strides=(1, 2, 2, 1),
                          padding=((0, 0), (1, 1), (1, 1), (0, 0)))
    return y.astype(x_nhwc.dtype)


def avg_pool_2x2(x_nhwc):
    n, h, w, c = x_nhwc.shape
    y = x_nhwc.astype(jnp.float32).reshape(n, h // 2, 2, w // 2, 2, c)
    return y.mean(axis=(2, 4)).astype(x_nhwc.dtype)


# --------------------------------------------------------------------------
# Parameter init (shapes exactly as densenet121 + new 14-class head)
# --------------------------------------------------------------------------

def _init_conv(key, kh, kw, cin, cout):
    fan_in = kh * kw * cin
    return jax.random.normal(key, (kh, kw, cin, cout), jnp.float32) * (2.0 / fan_in) ** 0.5


def _init_bn(key, c):
    k1, k2, k3, k4 = jax.random.split(key, 4)
    gamma = 1.0 + 0.1 * jax.random.normal(k1, (c,), jnp.float32)
    beta = 0.1 * jax.random.normal(k2, (c,), jnp.float32)
    mean = 0.1 * jax.random.normal(k3, (c,), jnp.float32)
    var = 1.0 + 0.1 * jnp.abs(jax.random.normal(k4, (c,), jnp.float32))
    return (gamma, beta, mean, var)


def init_chexnet_params(key):
    keys = iter(jax.random.split(key, 512))
    params = {}
    params['conv0'] = _init_conv(next(keys), 7, 7, 3, NUM_INIT_FEATURES)
    params['norm0'] = _init_bn(next(keys), NUM_INIT_FEATURES)
    num_features = NUM_INIT_FEATURES
    blocks = []
    for bi, num_layers in enumerate(BLOCK_CONFIG):
        layers = []
        for li in range(num_layers):
            cin = num_features + li * GROWTH
            layers.append({
                'norm1': _init_bn(next(keys), cin),
                'conv1': _init_conv(next(keys), 1, 1, cin, BN_SIZE * GROWTH),
                'norm2': _init_bn(next(keys), BN_SIZE * GROWTH),
                'conv2': _init_conv(next(keys), 3, 3, BN_SIZE * GROWTH, GROWTH),
            })
        num_features += num_layers * GROWTH
        block = {'layers': layers}
        if bi != len(BLOCK_CONFIG) - 1:
            block['trans_norm'] = _init_bn(next(keys), num_features)
            block['trans_conv'] = _init_conv(next(keys), 1, 1, num_features,
                                             num_features // 2)
            num_features //= 2
        blocks.append(block)
    params['blocks'] = blocks
    params['norm5'] = _init_bn(next(keys), num_features)
    kw_, kb_ = jax.random.split(next(keys))
    params['classifier_w'] = jax.random.normal(
        kw_, (num_features, NUM_CLASSES), jnp.float32) * (1.0 / num_features) ** 0.5
    params['classifier_b'] = 0.01 * jax.random.normal(
        kb_, (NUM_CLASSES,), jnp.float32)
    return params


# --------------------------------------------------------------------------
# One-time parameter preparation: reshape/pad conv weights to bf16 matmul
# matrices and fold BN running stats into (scale, shift) vectors, pre-padded
# to the matmul's K/N padding so nothing is re-padded per forward pass.
# --------------------------------------------------------------------------

def _bn_scale_shift(bn):
    # TODO(synk): BatchNorm is inference-mode only (running statistics).
    gamma, beta, mean, var = bn
    scale = gamma / jnp.sqrt(var + BN_EPS)
    shift = beta - mean * scale
    return scale, shift


def _pad_vec(v, p):
    return jnp.zeros((1, p), jnp.float32).at[0, :v.shape[0]].set(
        v.astype(jnp.float32))


def _prep_conv(w):
    kh, kw, cin, cout = w.shape
    K = kh * kw * cin
    Kp = _round_up(max(K, 128), 128)
    Np = _round_up(max(cout, 128), 128)
    wp = jnp.zeros((Kp, Np), jnp.bfloat16).at[:K, :cout].set(
        w.reshape(K, cout).astype(jnp.bfloat16))
    return {'w': wp, 'kh': kh, 'kw': kw, 'cin': cin, 'cout': cout}


def prepare_chexnet_params(p):
    prep = {}
    c0 = _prep_conv(p['conv0'])
    prep['conv0'] = c0
    s0, sh0 = _bn_scale_shift(p['norm0'])
    np0 = c0['w'].shape[1]
    prep['norm0'] = (_pad_vec(s0, np0), _pad_vec(sh0, np0))

    blocks = []
    for block in p['blocks']:
        layers = []
        for layer in block['layers']:
            c1 = _prep_conv(layer['conv1'])
            c2 = _prep_conv(layer['conv2'])
            s1, sh1 = _bn_scale_shift(layer['norm1'])
            s2, sh2 = _bn_scale_shift(layer['norm2'])
            kp1 = c1['w'].shape[0]
            kp2 = c2['w'].shape[0]
            layers.append({
                'conv1': c1,
                'in1': (_pad_vec(s1, kp1), _pad_vec(sh1, kp1)),
                'conv2': c2,
                # 3x3 im2col repeats channels 9x along K -> tile BN vectors 9x.
                'in2': (_pad_vec(jnp.tile(s2, 9), kp2),
                        _pad_vec(jnp.tile(sh2, 9), kp2)),
            })
        nb = {'layers': layers}
        if 'trans_norm' in block:
            ct = _prep_conv(block['trans_conv'])
            st, sht = _bn_scale_shift(block['trans_norm'])
            kpt = ct['w'].shape[0]
            nb['trans_conv'] = ct
            nb['trans_in'] = (_pad_vec(st, kpt), _pad_vec(sht, kpt))
        blocks.append(nb)
    prep['blocks'] = blocks

    s5, sh5 = _bn_scale_shift(p['norm5'])
    c = s5.shape[0]
    cp = _round_up(c, 128)
    prep['norm5'] = (jnp.zeros((1, 1, cp), jnp.float32).at[0, 0, :c].set(s5),
                     jnp.zeros((1, 1, cp), jnp.float32).at[0, 0, :c].set(sh5))
    prep['num_features'] = c

    wcls = p['classifier_w']
    kc, nc = wcls.shape
    kcp, ncp = _round_up(kc, 128), _round_up(nc, 128)
    prep['cls_w'] = jnp.zeros((kcp, ncp), jnp.bfloat16).at[:kc, :nc].set(
        wcls.astype(jnp.bfloat16))
    prep['cls_scale'] = jnp.ones((1, ncp), jnp.float32)
    prep['cls_shift'] = _pad_vec(p['classifier_b'], ncp)
    return prep


# --------------------------------------------------------------------------
# Forward pass (mirrors torchvision densenet121.forward + new classifier)
# --------------------------------------------------------------------------

def chexnet_forward(prep, x_nchw):
    # NCHW (PyTorch convention) -> NHWC bf16 internally.
    x = jnp.transpose(x_nchw.astype(jnp.float32), (0, 2, 3, 1)).astype(jnp.bfloat16)

    # Stem: conv0 with norm0+relu fused into the matmul epilogue, then maxpool.
    x = conv2d_fused(x, prep['conv0'], stride=2, padding=3,
                     out_aff=prep['norm0'], out_relu=True)
    x = max_pool_3x3_s2_p1(x)

    # Dense blocks + transitions (pre-activation BN+ReLU fused into prologue).
    for block in prep['blocks']:
        for layer in block['layers']:
            y = conv2d_fused(x, layer['conv1'],
                             in_aff=layer['in1'], in_relu=True)      # 1x1 bottleneck
            y = conv2d_fused(y, layer['conv2'], padding=1,
                             in_aff=layer['in2'], in_relu=True)      # 3x3
            # TODO(synk): dense concat still copies the growing feature map;
            # writing new channels in place via output index_map would remove it.
            x = jnp.concatenate([x, y], axis=-1)
        if 'trans_conv' in block:
            x = conv2d_fused(x, block['trans_conv'],
                             in_aff=block['trans_in'], in_relu=True)
            x = avg_pool_2x2(x)

    # norm5 + relu + adaptive_avg_pool2d(1,1) fused into one Pallas kernel.
    n, h, w, c = x.shape
    cp = prep['norm5'][0].shape[-1]
    x3d = jnp.zeros((n, h * w, cp), x.dtype).at[:, :, :c].set(
        x.reshape(n, h * w, c))
    feat = pallas_gap_bn_relu(x3d, prep['norm5'][0], prep['norm5'][1], c)

    # Linear(1024, 14): bias fused into the matmul epilogue.
    logits = fused_matmul(feat, prep['cls_w'], NUM_CLASSES,
                          out_scale=prep['cls_scale'],
                          out_shift=prep['cls_shift'],
                          out_relu=False, out_dtype=jnp.float32)
    return logits


if __name__ == "__main__":
    key = jax.random.PRNGKey(0)
    pkey, xkey = jax.random.split(key)
    raw_params = init_chexnet_params(pkey)
    params = prepare_chexnet_params(raw_params)   # one-time weight prep
    # Small but structurally valid input: 32x32 survives the /32 downsampling
    # of DenseNet-121 (stem /4 + three /2 transitions).
    x = jax.random.normal(xkey, (2, 3, 32, 32), jnp.float32)       # NCHW
    logits = jax.block_until_ready(chexnet_forward(params, x))
    assert logits.shape == (2, NUM_CLASSES), logits.shape
    assert jnp.all(jnp.isfinite(logits))
    print("KERNEL_OK")
</pallas_src>

<mosaic_0001>
module attributes {stable_mosaic.version = 11 : i64} {
  func.func @_fused_matmul_kernel(%arg0: i32, %arg1: i32, %arg2: i32, %arg3: memref<256x256xbf16, #tpu.memory_space<vmem>>, %arg4: memref<256x128xbf16, #tpu.memory_space<vmem>>, %arg5: memref<1x256xf32, #tpu.memory_space<vmem>>, %arg6: memref<1x256xf32, #tpu.memory_space<vmem>>, %arg7: memref<1x128xf32, #tpu.memory_space<vmem>>, %arg8: memref<1x128xf32, #tpu.memory_space<vmem>>, %arg9: memref<256x128xbf16, #tpu.memory_space<vmem>>, %arg10: memref<256x128xf32, #tpu.memory_space<vmem>>) attributes {dimension_semantics = [#tpu.dimension_semantics<parallel>, #tpu.dimension_semantics<parallel>, #tpu.dimension_semantics<arbitrary>], iteration_bounds = array<i64: 2, 1, 1>, scalar_prefetch = 0 : i64, scratch_operands = 1 : i64, tpu.core_type = #tpu.core_type<tc>, window_params = [{transform_indices = @transform_0, window_bounds = array<i64: 256, 256>}, {transform_indices = @transform_1, window_bounds = array<i64: 256, 128>}, {transform_indices = @transform_2, window_bounds = array<i64: 1, 256>}, {transform_indices = @transform_3, window_bounds = array<i64: 1, 256>}, {transform_indices = @transform_4, window_bounds = array<i64: 1, 128>}, {transform_indices = @transform_5, window_bounds = array<i64: 1, 128>}, {transform_indices = @transform_6, window_bounds = array<i64: 256, 128>}]} {
    %c0_i32 = arith.constant 0 : i32
    %0 = arith.cmpi eq, %arg2, %c0_i32 : i32
    %1 = arith.extui %0 : i1 to i32
    %c0_i32_0 = arith.constant 0 : i32
    %2 = arith.cmpi ne, %1, %c0_i32_0 : i32
    scf.if %2 {
      %cst_10 = arith.constant 0.000000e+00 : f32
      %12 = vector.broadcast %cst_10 : f32 to vector<256x128xf32>
      %c0_11 = arith.constant 0 : index
      %c0_12 = arith.constant 0 : index
      %13 = vector.load %arg10[%c0_11, %c0_12] : memref<256x128xf32, #tpu.memory_space<vmem>>, vector<256x128xf32>
      tpu.vector_store %arg10[%c0_11, %c0_12], %12 {strides = array<i32>} : memref<256x128xf32, #tpu.memory_space<vmem>>, vector<256x128xf32>,
    } else {
    }
    %c0 = arith.constant 0 : index
    %c0_1 = arith.constant 0 : index
    %3 = vector.load %arg3[%c0, %c0_1] : memref<256x256xbf16, #tpu.memory_space<vmem>>, vector<256x256xbf16>
    %c0_2 = arith.constant 0 : index
    %c0_3 = arith.constant 0 : index
    %4 = vector.load %arg10[%c0_2, %c0_3] : memref<256x128xf32, #tpu.memory_space<vmem>>, vector<256x128xf32>
    %c0_4 = arith.constant 0 : index
    %c0_5 = arith.constant 0 : index
    %5 = vector.load %arg4[%c0_4, %c0_5] : memref<256x128xbf16, #tpu.memory_space<vmem>>, vector<256x128xbf16>
    %cst = arith.constant dense<0.000000e+00> : vector<256x128xf32>
    %6 = tpu.matmul %3, %5, %cst {dimension_numbers = #tpu.dot_dimension_numbers<[1], [0], [0], [1], [0, 0, 1, 1], [], []>} : vector<256x256xbf16>, vector<256x128xbf16>, vector<256x128xf32> -> vector<256x128xf32>
    %7 = arith.addf %4, %6 : vector<256x128xf32>
    %c0_6 = arith.constant 0 : index
    %c0_7 = arith.constant 0 : index
    %8 = vector.load %arg10[%c0_6, %c0_7] : memref<256x128xf32, #tpu.memory_space<vmem>>, vector<256x128xf32>
    tpu.vector_store %arg10[%c0_6, %c0_7], %7 {strides = array<i32>} : memref<256x128xf32, #tpu.memory_space<vmem>>, vector<256x128xf32>,
    %c0_i32_8 = arith.constant 0 : i32
    %9 = arith.cmpi eq, %arg2, %c0_i32_8 : i32
    %10 = arith.extui %9 : i1 to i32
    %c0_i32_9 = arith.constant 0 : i32
    %11 = arith.cmpi ne, %10, %c0_i32_9 : i32
    scf.if %11 {
      %c0_10 = arith.constant 0 : index
      %c0_11 = arith.constant 0 : index
      %12 = vector.load %arg10[%c0_10, %c0_11] : memref<256x128xf32, #tpu.memory_space<vmem>>, vector<256x128xf32>
      %c0_12 = arith.constant 0 : index
      %c0_13 = arith.constant 0 : index
      %13 = vector.load %arg7[%c0_12, %c0_13] : memref<1x128xf32, #tpu.memory_space<vmem>>, vector<1x128xf32>
      %14 = vector.broadcast %13 : vector<1x128xf32> to vector<256x128xf32>
      %15 = arith.mulf %12, %14 : vector<256x128xf32>
      %c0_14 = arith.constant 0 : index
      %c0_15 = arith.constant 0 : index
      %16 = vector.load %arg8[%c0_14, %c0_15] : memref<1x128xf32, #tpu.memory_space<vmem>>, vector<1x128xf32>
      %17 = vector.broadcast %16 : vector<1x128xf32> to vector<256x128xf32>
      %18 = arith.addf %15, %17 : vector<256x128xf32>
      %cst_16 = arith.constant 0.000000e+00 : f32
      %19 = vector.broadcast %cst_16 : f32 to vector<256x128xf32>
      %20 = arith.maximumf %18, %19 : vector<256x128xf32>
      %21 = arith.truncf %20 : vector<256x128xf32> to vector<256x128xbf16>
      %c0_17 = arith.constant 0 : index
      %c0_18 = arith.constant 0 : index
      %22 = vector.load %arg9[%c0_17, %c0_18] : memref<256x128xbf16, #tpu.memory_space<vmem>>, vector<256x128xbf16>
      tpu.vector_store %arg9[%c0_17, %c0_18], %21 {strides = array<i32>} : memref<256x128xbf16, #tpu.memory_space<vmem>>, vector<256x128xbf16>,
    } else {
    }
    return
  }
  func.func @transform_0(%arg0: i32, %arg1: i32, %arg2: i32) -> (i32, i32) {
    %c0_i32 = arith.constant 0 : i32
    return %arg0, %arg2 : i32, i32
  }
  func.func @transform_1(%arg0: i32, %arg1: i32, %arg2: i32) -> (i32, i32) {
    %c0_i32 = arith.constant 0 : i32
    return %arg2, %arg1 : i32, i32
  }
  func.func @transform_2(%arg0: i32, %arg1: i32, %arg2: i32) -> (i32, i32) {
    %c0_i32 = arith.constant 0 : i32
    %c0_i32_0 = arith.constant 0 : i32
    return %c0_i32, %arg2 : i32, i32
  }
  func.func @transform_3(%arg0: i32, %arg1: i32, %arg2: i32) -> (i32, i32) {
    %c0_i32 = arith.constant 0 : i32
    %c0_i32_0 = arith.constant 0 : i32
    return %c0_i32, %arg2 : i32, i32
  }
  func.func @transform_4(%arg0: i32, %arg1: i32, %arg2: i32) -> (i32, i32) {
    %c0_i32 = arith.constant 0 : i32
    %c0_i32_0 = arith.constant 0 : i32
    return %c0_i32, %arg1 : i32, i32
  }
  func.func @transform_5(%arg0: i32, %arg1: i32, %arg2: i32) -> (i32, i32) {
    %c0_i32 = arith.constant 0 : i32
    %c0_i32_0 = arith.constant 0 : i32
    return %c0_i32, %arg1 : i32, i32
  }
  func.func @transform_6(%arg0: i32, %arg1: i32, %arg2: i32) -> (i32, i32) {
    %c0_i32 = arith.constant 0 : i32
    return %arg0, %arg1 : i32, i32
  }
}

</mosaic_0001>

<bundles_post_ra>
// kernel: tpu_custom_call.1
= control target key start
LH: loop header
LB: loop body
LE: loop exit
PB: predicated region body
PF: predicated region fallthrough
CT: control target
= control target key end

     0   :  { %11 = vsyncpa [#allocation4], 0  ;;  %s2519_s0 = inlined_call_operand.hbm [shape: bf16[512,256], index: 0, kind: input, shape index: {}]   ;;  %s2520_s1 = inlined_call_operand.hbm [shape: bf16[256,128], index: 1, kind: input, shape index: {}]   ;;  %s2521_s2 = inlined_call_operand.vmem [shape: f32[1,256], index: 2, kind: input, shape index: {}]   ;;  %s2522_s3 = inlined_call_operand.vmem [shape: f32[1,256], index: 3, kind: input, shape index: {}]   ;;  %s2523_s4 = inlined_call_operand.vmem [shape: f32[1,128], index: 4, kind: input, shape index: {}]   ;;  %s2524_s5 = inlined_call_operand.vmem [shape: f32[1,128], index: 5, kind: input, shape index: {}]   ;;  %s2525_s6 = inlined_call_operand.hbm [shape: bf16[512,128], index: 6, kind: output, shape index: {}]  }
   0x1   :  { %13 = vsyncpa [#allocation4 + $0x1], 0 }
   0x2   :  { %14 = vsyncpa [#allocation7], 0 }
   0x3   :  { %15 = vsyncpa [#allocation5], 0 }
   0x4   :  { %17 = vsyncpa [#allocation5 + $0x1], 0  ;;  %s2172_s21 = smov 0   ;;  %s2174_s2 = smov 0  }
   0x5   :  { %s2176_s22 = smov 0   ;;  %s2178_s3 = smov 0  }
   0x6   :  { %s2180_s23 = smov 0   ;;  %s2182_s24 = smov 0  }
   0x7 LB: > { %s1477_s25 = sadd.s32 4294967295, %s2126_s24   ;;  %s1478_s26 = sadd.s32 4294967294, %s2126_s24   ;;  %s2126_s24 = sphi %s2182_s24, %s23_s24   ;;  %s2122_s23 = sphi %s2180_s23, %s2549_s23   ;;  %s2118_s3 = sphi %s2178_s3, %s2548_s3   ;;  %s2114_s22 = sphi %s2176_s22, %s2547_s22   ;;  %s2110_s2 = sphi %s2174_s2, %s2546_s2   ;;  %s2106_s21 = sphi %s2172_s21, %s2545_s21  }
   0x8   : > { %p64_p0 = scmp.ne.s32.totalorder %s2110_s2, %s2106_s21  ;;  %p2206_p1 = scmp.eq.s32.totalorder %s1477_s25, 0 }
   0x9   : > { %p2210_p2 = scmp.eq.s32.totalorder %s1477_s25, 1  ;;  %p228_p3 = scmp.eq.s32.totalorder %s1478_s26, 1 }
   0xa   : > { %s2530_s27 = scalar_select %p2206_p1, 1, 0 }
   0xb   : > { %s2531_s28 = scalar_select %p2210_p2, 1, 0 }
   0xc   : > { %p2216_p4 = por %p2206_p1, %p64_p0  ;;  %p1479_p5 = scmp.ge.s32.totalorder %s2126_s24, 1 }
   0xd   : > { %p2221_p6 = por %p228_p3, %p64_p0  ;;  %p235_p7 = scmp.lt.s32.totalorder %s2126_s24, 3 }
   0xe   : > { %s2532_s29 = scalar_select %p2216_p4, 1, 0 }
   0xf   : > { %s2533_s30 = scalar_select %p2221_p6, 1, 0 }
  0x10   : > { %p2226_p8 = pnand %p1479_p5, %p235_p7  ;;  %s2128_s8 = smov [#allocation6]  }
  0x11   : > { %s251_s9 = sshll.u32 %s2128_s8, 4  ;;  %s42_s11 = sadd.s32 1, %s2122_s23  ;;  %s252_s9 = int_to_ptr.vmem [resolvable:$true] %s251_s9 }
  0x12   : > { %s2534_s7 = scalar_select %p2226_p8, 1, 0 }
  0x13   : > { %p1847_p9 = pneg %p2226_p8  ;;  %s1982_s14 = scalar_lea.hbm %s2520_s1, 2048 }
  0x14   : > { %p1983_p12 = scmp.ne.s32.totalorder %s2520_s1, %s1982_s14  ;;  %p1989_p5 = scmp.lt.u32.totalorder %s1982_s14, %s2520_s1 }
  0x15   : > { %p2235_p11 = pnand %p1847_p9, %p2206_p1 }
  0x17   : > { %p1984_p13 = pneg %p2235_p11 }
  0x19   : > { %p1985_p0 = pnand %p1984_p13, %p1983_p12 }
  0x1b   : > { %p1986_p3 = pneg %p1985_p0 }
  0x1d   : > { %p1991_p7 = pnand %p1989_p5, %p1986_p3 }
  0x1f   : > { %1994 = shalt.err (!%p1991_p7)
}
  0x20   : > { %s1995_s19 = scalar_lea.vmem %s252_s9, 2048  ;;  %p2003_p1 = scmp.lt.s32.totalorder %s252_s9, %s252_s9 }
  0x21   : > { %p1996_p9 = scmp.ne.s32.totalorder %s252_s9, %s1995_s19  ;;  %p2004_p4 = scmp.lt.s32.totalorder %s1995_s19, %s1995_s19 }
  0x23   : > { %p1998_p10 = pnand %p1996_p9, %p1984_p13  ;;  %p2005_p8 = por %p2004_p4, %p2003_p1 }
  0x25   : > { %p1999_p6 = pneg %p1998_p10 }
  0x27   : > { %p2006_p2 = pnand %p2005_p8, %p1999_p6 }
  0x29   : > { %2009 = shalt.err (!%p2006_p2)
}
  0x2a   : > { %s2129_s20 = smov 64   ;;  %s2130_s25 = smov 4  }
  0x2b   : > { %1850 = dma.hbm_to_vmem [thread:$0]  (!%p2235_p11), %s2520_s1, 2048, %s252_s9, [#allocation7], %s2129_s20, %s2129_s20, %s2130_s25  }
  0x2c   : > { %p44_p1 = scmp.ge.s32.totalorder %s42_s11, 2  ;;  %s51_s12 = sadd.s32 1, %s2114_s22 }
  0x2d   : > { %p58_p2 = scmp.ne.s32.totalorder %s2114_s22, %s2110_s2  ;;  %p59_p4 = scmp.eq.s32.totalorder %s2126_s24, 0 }
  0x2e   : > { %s2551_s11 = smov (%p44_p1, %s42_s11), 0  ;;  %p2537_p8 = scmp.ne.s32.totalorder %s2531_s28, 0 }
  0x2f   : > { %p2262_p6 = por %p59_p4, %p58_p2  ;;  %s46_s10 = ssub.s32 %s2122_s23, %s2551_s11 }
  0x30   : > { %p2268_p10 = por %p2537_p8, %p58_p2  ;;  %p1860_p12 = scmp.lt.s32.totalorder %s2126_s24, 2 }
  0x31   : > { %p49_p11 = scmp.eq.s32.totalorder %s46_s10, 0  ;;  %s293_s9 = sand.u32 1, %s2114_s22  }
  0x32   : > { %s1486_s15 = sshll.u32 %s293_s9, 8  ;;  %s1582_s17 = sshll.u32 %s2122_s23, 12 }
  0x33   : > { %s2277_s16 = scalar_select %p49_p11, %s2114_s22, %s51_s12  }
  0x34   : > { %s2283_s20 = scalar_lea.hbm %s2519_s0, %s1582_s17  ;;  %s297_s28 = scalar_lea.vmem [#allocation3], %s1486_s15 }
  0x35   : > { %s307_s25 = sshll.u32 %s297_s28, 4  ;;  %p2289_p13 = pnand %p1860_p12, %p2262_p6  ;;  %s2285_s25 = int_to_ptr.vmem [resolvable:$true] %s307_s25 }
  0x36   : > { %s2293_s8 = scalar_lea.sflag [#allocation4], %s293_s9  ;;  %s2010_s12 = scalar_lea.hbm %s2283_s20, 4096 }
  0x37   : > { %p2011_p0 = scmp.ne.s32.totalorder %s2283_s20, %s2010_s12  ;;  %p2012_p3 = pneg %p2289_p13 }
  0x38   : > { %s2015_s13 = scalar_lea.hbm %s2519_s0, 8192  ;;  %p2016_p9 = scmp.lt.u32.totalorder %s2283_s20, %s2519_s0 }
  0x39   : > { %p2013_p5 = pnand %p2012_p3, %p2011_p0  ;;  %p2017_p1 = scmp.lt.u32.totalorder %s2015_s13, %s2010_s12 }
  0x3a   : > { %p2019_p4 = scmp.lt.u32.totalorder %s2010_s12, %s2283_s20 }
  0x3b   : > { %p2014_p7 = pneg %p2013_p5  ;;  %p2018_p2 = por %p2017_p1, %p2016_p9 }
  0x3d   : > { %p2020_p6 = por %p2019_p4, %p2018_p2 }
  0x3f   : > { %p2021_p8 = pnand %p2020_p6, %p2014_p7 }
  0x41   : > { %2024 = shalt.err (!%p2021_p8)
}
  0x42   : > { %s2025_s9 = scalar_lea.vmem %s2285_s25, 4096  ;;  %s2131_s19 = smov [#allocation3]  }
  0x43   : > { %p2026_p12 = scmp.ne.s32.totalorder %s2285_s25, %s2025_s9  ;;  %s2030_s28 = sshll.u32 %s2131_s19, 4  ;;  %s2031_s28 = int_to_ptr.vmem [resolvable:$false] %s2030_s28 }
  0x44   : > { %s2032_s10 = scalar_lea.vmem %s2031_s28, 8192  ;;  %p2033_p5 = scmp.lt.s32.totalorder %s2285_s25, %s2031_s28 }
  0x45   : > { %p2028_p11 = pnand %p2026_p12, %p2012_p3  ;;  %p2034_p9 = scmp.lt.s32.totalorder %s2032_s10, %s2025_s9 }
  0x47   : > { %p2029_p0 = pneg %p2028_p11  ;;  %p2035_p1 = por %p2034_p9, %p2033_p5 }
  0x49   : > { %p2036_p2 = pnand %p2035_p1, %p2029_p0 }
  0x4b   : > { %2039 = shalt.err (!%p2036_p2)
}
  0x4c   : > { %s2132_s12 = smov 128   ;;  %s2133_s15 = smov 8  }
  0x4d   : > { %1854 = dma.hbm_to_vmem [thread:$0]  (!%p2289_p13), %s2283_s20, 4096, %s2285_s25, %s2293_s8, %s2132_s12, %s2132_s12, %s2133_s15  }
  0x4e   : > { %p2540_p3 = scmp.ne.s32.totalorder %s2534_s7, 0 }
  0x4f   : > { %s2324_s13 = sand.u32 (!%p2540_p3), 1, %s2110_s2   ;;  %p2541_p7 = scmp.ne.s32.totalorder (!%p2540_p3), %s2532_s29, 0 }
  0x50   : > { %319 = sbr.rel (%p2540_p3) target bundleno = 421 (0x1a5), region = 44  ;;  %s1491_s17 = sshll.u32 (!%p2540_p3), %s2324_s13, 8 }
  0x51   : > { %s322_s18 = scalar_lea.sflag (!%p2540_p3), [#allocation4], %s2324_s13  ;;  %s2328_s9 = scalar_lea.vmem (!%p2540_p3), [#allocation3], %s1491_s17 }
  0x57   : > { %2093 = dma.done.wait (%p2541_p7), %s322_s18, 4096  }
  0x58   : > { %2095 = vsyncadd (%p2541_p7), %s322_s18, 4294963200  ;;  %p2542_p13 = scmp.ne.s32.totalorder %s2530_s27, 0 }
  0x5a   : > { %2097 = dma.done.wait (%p2542_p13), [#allocation7], 2048  }
  0x5b   : > { %2099 = vsyncadd (%p2542_p13), [#allocation7], 4294965248  ;;  %v1918_v0 = vld [vmem:[#allocation6 + $0x40] sm:$0xff]   ;;  %v1920_v2 = vld [vmem:[#allocation6 + $0x48] sm:$0xff]   ;;  %s1493_s25 = sshll.u32 %s2324_s13, 7  ;;  %s1615_s8 = sshll.u32 %s2118_s3, 11 }
  0x5c   : > { %v1919_v1 = vld [vmem:[#allocation6] sm:$0xff]   ;;  %1711 = vmatprep.subr.bf16.mxu0 %v1918_v0  ;;  %1823 = vmatprep.subr.bf16.mxu1 %v1918_v0  ;;  %v1921_v3 = vld [vmem:[#allocation6 + $0x8] sm:$0xff]   ;;  %v1922_v4 = vld [vmem:[#allocation6 + $0x50] sm:$0xff]   ;;  %s2391_s26 = scalar_lea.vmem [#allocation8], %s1493_s25  ;;  %s2466_s12 = scalar_lea.hbm %s2525_s6, %s1615_s8 }
  0x5d   : > { %1712 = vmatpush3.bf16.msra.mxu0 %v1919_v1  ;;  %1831 = vmatpush3.bf16.msra.mxu1 %v1919_v1  ;;  %v1923_v5 = vld [vmem:[#allocation6 + $0x10] sm:$0xff]   ;;  %v1924_v6 = vld [vmem:[#allocation6 + $0x58] sm:$0xff]   ;;  %v1926_v8 = vld [vmem:[#allocation6 + $0x60] sm:$0xff]   ;;  %s1326_s19 = sshll.u32 %s2391_s26, 4  ;;  %s1312_s3 = scalar_lea.sflag [#allocation5], %s2324_s13  ;;  %s2468_s19 = int_to_ptr.vmem [resolvable:$true] %s1326_s19 }
  0x5e   : > { %1713 = vmatprep.subr.bf16.mxu0 %v1920_v2  ;;  %1824 = vmatprep.subr.bf16.mxu1 %v1920_v2  ;;  %v1925_v7 = vld [vmem:[#allocation6 + $0x18] sm:$0xff]   ;;  %v1927_v9 = vld [vmem:[#allocation6 + $0x20] sm:$0xff]   ;;  %v1928_v10 = vld [vmem:[#allocation6 + $0x68] sm:$0xff]   ;;  %s2040_s15 = scalar_lea.vmem %s2468_s19, 2048  ;;  %s2134_s17 = smov [#allocation8]  }
  0x5f   : > { %v1936_v11 = vld [vmem:[%s2328_s9 + $0x4] ss:$8 sps:$4 sm:$0xff]   ;;  %v1930_v14 = vld [vmem:[#allocation6 + $0x70] sm:$0xff]   ;;  %v1932_v16 = vld [vmem:[#allocation6 + $0x78] sm:$0xff]   ;;  %p2041_p4 = scmp.ne.s32.totalorder %s2468_s19, %s2040_s15  ;;  %s2044_s18 = sshll.u32 %s2134_s17, 4  ;;  %s2045_s18 = int_to_ptr.vmem [resolvable:$false] %s2044_s18 }
  0x60   : > { %v1939_v12 = vld [vmem:[%s2328_s9 + $0x84] ss:$8 sps:$4 sm:$0xff]   ;;  %813 = vmatprep.mubr.bf16.mxu0 %v1936_v11  ;;  %v1931_v15 = vld [vmem:[#allocation6 + $0x30] sm:$0xff]   ;;  %v1933_v17 = vld [vmem:[#allocation6 + $0x38] sm:$0xff]   ;;  %p2047_p12 = scmp.lt.s32.totalorder %s2468_s19, %s2045_s18 }
  0x61   : > { %1714 = vmatpush3.bf16.msra.mxu0 %v1921_v3  ;;  %1832 = vmatpush3.bf16.msra.mxu1 %v1921_v3  ;;  %v1929_v13 = vld [vmem:[#allocation6 + $0x28] sm:$0xff]   ;;  %v1940_v20 = vld [vmem:[%s2328_s9 + $0x14] ss:$8 sps:$4 sm:$0xff]   ;;  %v1944_v22 = vld [vmem:[%s2328_s9 + $0x10] ss:$8 sps:$4 sm:$0xff]   ;;  %p2042_p6 = pnand %p2041_p4, %p2268_p10 }
  0x62   : > { %1715 = vmatprep.subr.bf16.mxu0 %v1922_v4  ;;  %1825 = vmatprep.subr.bf16.mxu1 %v1922_v4  ;;  %v1934_v18 = vld [vmem:[%s2328_s9] ss:$8 sps:$4 sm:$0xff]   ;;  %v1942_v21 = vld [vmem:[%s2328_s9 + $0x94] ss:$8 sps:$4 sm:$0xff]   ;;  %v1945_v23 = vld [vmem:[%s2328_s9 + $0x90] ss:$8 sps:$4 sm:$0xff]  }
  0x63   : > { %877 = vmatprep.mubr.bf16.mxu1 %v1939_v12  ;;  %v1937_v19 = vld [vmem:[%s2328_s9 + $0x80] ss:$8 sps:$4 sm:$0xff]   ;;  %v1946_v24 = vld [vmem:[%s2328_s9 + $0x24] ss:$8 sps:$4 sm:$0xff]   ;;  %v1952_v28 = vld [vmem:[%s2328_s9 + $0x34] ss:$8 sps:$4 sm:$0xff]   ;;  %p2043_p8 = pneg %p2042_p6 }
  0x64   : > { %v1948_v25 = vld [vmem:[%s2328_s9 + $0xa4] ss:$8 sps:$4 sm:$0xff]   ;;  %v1950_v26 = vld [vmem:[%s2328_s9 + $0x20] ss:$8 sps:$4 sm:$0xff]   ;;  %v1954_v29 = vld [vmem:[%s2328_s9 + $0xb4] ss:$8 sps:$4 sm:$0xff]  }
  0x65   : > { %1716 = vmatpush3.bf16.msra.mxu0 %v1923_v5  ;;  %1833 = vmatpush3.bf16.msra.mxu1 %v1923_v5  ;;  %v1951_v27 = vld [vmem:[%s2328_s9 + $0xa0] ss:$8 sps:$4 sm:$0xff]   ;;  %v1956_v30 = vld [vmem:[%s2328_s9 + $0x30] ss:$8 sps:$4 sm:$0xff]   ;;  %v1958_v32 = vld [vmem:[%s2328_s9 + $0x44] ss:$8 sps:$4 sm:$0xff]  }
  0x66   : > { %1717 = vmatprep.subr.bf16.mxu0 %v1924_v6  ;;  %1826 = vmatprep.subr.bf16.mxu1 %v1924_v6  ;;  %v1957_v31 = vld [vmem:[%s2328_s9 + $0xb0] ss:$8 sps:$4 sm:$0xff]   ;;  %v1960_v33 = vld [vmem:[%s2328_s9 + $0xc4] ss:$8 sps:$4 sm:$0xff]   ;;  %v1962_v34 = vld [vmem:[%s2328_s9 + $0x40] ss:$8 sps:$4 sm:$0xff]  }
  0x67   : > { %v1963_v35 = vld [vmem:[%s2328_s9 + $0xc0] ss:$8 sps:$4 sm:$0xff]   ;;  %v1964_v36 = vld [vmem:[%s2328_s9 + $0x54] ss:$8 sps:$4 sm:$0xff]   ;;  %v1968_v38 = vld [vmem:[%s2328_s9 + $0x50] ss:$8 sps:$4 sm:$0xff]  }
  0x68   : > { %v1966_v37 = vld [vmem:[%s2328_s9 + $0xd4] ss:$8 sps:$4 sm:$0xff]   ;;  %v1969_v39 = vld [vmem:[%s2328_s9 + $0xd0] ss:$8 sps:$4 sm:$0xff]   ;;  %v1970_v40 = vld [vmem:[%s2328_s9 + $0x64] ss:$8 sps:$4 sm:$0xff]  }
  0x69   : > { %1718 = vmatpush3.bf16.msra.mxu0 %v1925_v7  ;;  %1834 = vmatpush3.bf16.msra.mxu1 %v1925_v7  ;;  %v1972_v41 = vld [vmem:[%s2328_s9 + $0xe4] ss:$8 sps:$4 sm:$0xff]   ;;  %v1974_v42 = vld [vmem:[%s2328_s9 + $0x60] ss:$8 sps:$4 sm:$0xff]   ;;  %v1976_v44 = vld [vmem:[%s2328_s9 + $0x74] ss:$8 sps:$4 sm:$0xff]  }
  0x6a   : > { %1719 = vmatprep.subr.bf16.mxu0 %v1926_v8  ;;  %1827 = vmatprep.subr.bf16.mxu1 %v1926_v8  ;;  %v1975_v43 = vld [vmem:[%s2328_s9 + $0xe0] ss:$8 sps:$4 sm:$0xff]   ;;  %v1978_v45 = vld [vmem:[%s2328_s9 + $0xf4] ss:$8 sps:$4 sm:$0xff]   ;;  %v1980_v46 = vld [vmem:[%s2328_s9 + $0x70] ss:$8 sps:$4 sm:$0xff]  }
  0x6b   : > { %v1981_v47 = vld [vmem:[%s2328_s9 + $0xf0] ss:$8 sps:$4 sm:$0xff]   ;;  %v2373_v51 = vld [vmem:[%s2523_s4] ss:$0 sm:$0xff]  ;;  %s2046_s9 = scalar_lea.vmem %s2045_s18, 4096 }
  0x6c   : > { %v2378_v57 = vld [vmem:[%s2524_s5] ss:$0 sm:$0xff]  ;;  %p2048_p11 = scmp.lt.s32.totalorder %s2046_s9, %s2040_s15 }
  0x6d   : > { %1720 = vmatpush3.bf16.msra.mxu0 %v1927_v9  ;;  %1835 = vmatpush3.bf16.msra.mxu1 %v1927_v9 }
  0x6e   : > { %1721 = vmatprep.subr.bf16.mxu0 %v1928_v10  ;;  %1828 = vmatprep.subr.bf16.mxu1 %v1928_v10  ;;  %p2049_p0 = por %p2048_p11, %p2047_p12 }
  0x70   : > { %p2050_p5 = pnand %p2049_p0, %p2043_p8 }
  0x71   : > { %1722 = vmatpush3.bf16.msra.mxu0 %v1929_v13  ;;  %1836 = vmatpush3.bf16.msra.mxu1 %v1929_v13 }
  0x72   : > { %1723 = vmatprep.subr.bf16.mxu0 %v1930_v14  ;;  %1829 = vmatprep.subr.bf16.mxu1 %v1930_v14 }
  0x75   : > { %1724 = vmatpush3.bf16.msra.mxu0 %v1931_v15  ;;  %1837 = vmatpush3.bf16.msra.mxu1 %v1931_v15 }
  0x76   : > { %1725 = vmatprep.subr.bf16.mxu0 %v1932_v16  ;;  %1830 = vmatprep.subr.bf16.mxu1 %v1932_v16 }
  0x79   : > { %1726 = vmatpush3.bf16.msra.mxu0 %v1933_v17  ;;  %1838 = vmatpush3.bf16.msra.mxu1 %v1933_v17 }
  0x7c   : > { %814 = vmatmul.mubr.bf16.vlgmr.msra.gmra.mrb[0].mxu0 %v1934_v18  ;;  %878 = vmatmul.mubr.bf16.vlgmr.msra.gmra.mrb[0].mxu1 %v1937_v19 }
  0x7d   : > { %821 = vmatprep.mubr.bf16.mxu0 %v1940_v20  ;;  %885 = vmatprep.mubr.bf16.mxu1 %v1942_v21 }
  0x84   : > { %822 = vmatmul.mubr.bf16.gmra.mrb[4].mxu0 %v1944_v22  ;;  %886 = vmatmul.mubr.bf16.gmra.mrb[4].mxu1 %v1945_v23 }
  0x85   : > { %829 = vmatprep.mubr.bf16.mxu0 %v1946_v24  ;;  %893 = vmatprep.mubr.bf16.mxu1 %v1948_v25 }
  0x8c   : > { %830 = vmatmul.mubr.bf16.gmra.mrb[8].mxu0 %v1950_v26  ;;  %894 = vmatmul.mubr.bf16.gmra.mrb[8].mxu1 %v1951_v27 }
  0x8d   : > { %837 = vmatprep.mubr.bf16.mxu0 %v1952_v28  ;;  %901 = vmatprep.mubr.bf16.mxu1 %v1954_v29 }
  0x94   : > { %838 = vmatmul.mubr.bf16.gmra.mrb[12].mxu0 %v1956_v30  ;;  %902 = vmatmul.mubr.bf16.gmra.mrb[12].mxu1 %v1957_v31 }
  0x95   : > { %845 = vmatprep.mubr.bf16.mxu0 %v1958_v32  ;;  %909 = vmatprep.mubr.bf16.mxu1 %v1960_v33 }
  0x9c   : > { %846 = vmatmul.mubr.bf16.gmra.mrb[16].mxu0 %v1962_v34  ;;  %910 = vmatmul.mubr.bf16.gmra.mrb[16].mxu1 %v1963_v35 }
  0x9d   : > { %853 = vmatprep.mubr.bf16.mxu0 %v1964_v36  ;;  %917 = vmatprep.mubr.bf16.mxu1 %v1966_v37 }
  0xa4   : > { %854 = vmatmul.mubr.bf16.gmra.mrb[20].mxu0 %v1968_v38  ;;  %918 = vmatmul.mubr.bf16.gmra.mrb[20].mxu1 %v1969_v39 }
  0xa5   : > { %861 = vmatprep.mubr.bf16.mxu0 %v1970_v40  ;;  %925 = vmatprep.mubr.bf16.mxu1 %v1972_v41 }
  0xac   : > { %862 = vmatmul.mubr.bf16.gmra.mrb[24].mxu0 %v1974_v42  ;;  %926 = vmatmul.mubr.bf16.gmra.mrb[24].mxu1 %v1975_v43 }
  0xad   : > { %869 = vmatprep.mubr.bf16.mxu0 %v1976_v44  ;;  %933 = vmatprep.mubr.bf16.mxu1 %v1978_v45 }
  0xb4   : > { %870 = vmatmul.mubr.bf16.gmra.mrb[28].mxu0 %v1980_v46  ;;  %934 = vmatmul.mubr.bf16.gmra.mrb[28].mxu1 %v1981_v47 }
 0x14f   : > { %v1727_v48 = vpop.f32.mrb[0].mxu0  ;;  %v1775_v49 = vpop.f32.mrb[0].mxu1 }
 0x150   : > { %v1728_v50 = vpop.f32.mrb[1].mxu0  ;;  %v1776_v52 = vpop.f32.mrb[1].mxu1 }
 0x151   : > { %v1729_v53 = vadd.f32 %v1728_v50, %v1727_v48  ;;  %v1777_v54 = vadd.f32 %v1776_v52, %v1775_v49  ;;  %v1730_v55 = vpop.f32.mrb[2].mxu0  ;;  %v1778_v56 = vpop.f32.mrb[2].mxu1 }
 0x152   : > { %v1731_v58 = vpop.f32.mrb[3].mxu0  ;;  %v1779_v59 = vpop.f32.mrb[3].mxu1 }
 0x153   : > { %v1048_v60 = vmul.f32 %v1729_v53, %v2373_v51  ;;  %v1064_v61 = vmul.f32 %v1777_v54, %v2373_v51  ;;  %v1732_v62 = vadd.f32 %v1731_v58, %v1730_v55  ;;  %v1780_v63 = vadd.f32 %v1779_v59, %v1778_v56 }
 0x155   : > { %v1087_v0 = vadd.f32 %v2378_v57, %v1048_v60  ;;  %v1103_v1 = vadd.f32 %v2378_v57, %v1064_v61  ;;  %v1049_v2 = vmul.f32 %v1732_v62, %v2373_v51  ;;  %v1065_v3 = vmul.f32 %v1780_v63, %v2373_v51 }
 0x157   : > { %v1088_v4 = vadd.f32 %v2378_v57, %v1049_v2  ;;  %v1104_v5 = vadd.f32 %v2378_v57, %v1065_v3  ;;  %v1733_v6 = vpop.f32.mrb[4].mxu0  ;;  %v1781_v7 = vpop.f32.mrb[4].mxu1  ;;  %v1119_v8 = vmax.f32 %v1087_v0, 0.0  ;;  %v1135_v9 = vmax.f32 %v1103_v1, 0.0 }
 0x158   : > { %v1734_v10 = vpop.f32.mrb[5].mxu0  ;;  %v1782_v11 = vpop.f32.mrb[5].mxu1 }
 0x159   : > { %v1120_v12 = vmax.f32 %v1088_v4, 0.0  ;;  %v1136_v13 = vmax.f32 %v1104_v5, 0.0  ;;  %v1735_v14 = vadd.f32 %v1734_v10, %v1733_v6  ;;  %v1783_v15 = vadd.f32 %v1782_v11, %v1781_v7  ;;  %v1736_v16 = vpop.f32.mrb[6].mxu0  ;;  %v1784_v17 = vpop.f32.mrb[6].mxu1 }
 0x15a   : > { %v1737_v18 = vpop.f32.mrb[7].mxu0  ;;  %v1785_v19 = vpop.f32.mrb[7].mxu1 }
 0x15b   : > { %v1619_v20 = vpack.c.bf16 %v1120_v12, %v1119_v8  ;;  %v1659_v21 = vpack.c.bf16 %v1136_v13, %v1135_v9  ;;  %v1050_v22 = vmul.f32 %v1735_v14, %v2373_v51  ;;  %v1066_v23 = vmul.f32 %v1783_v15, %v2373_v51 }
 0x15c   : > { %v1738_v24 = vadd.f32 %v1737_v18, %v1736_v16  ;;  %v1786_v25 = vadd.f32 %v1785_v19, %v1784_v17 }
 0x15d   : > { %1620 = vst [vmem:[%s2391_s26] sm:$0xff] %v1619_v20   ;;  %1703 = vst [vmem:[%s2391_s26 + $0x40] sm:$0xff] %v1659_v21   ;;  %v1089_v26 = vadd.f32 %v2378_v57, %v1050_v22  ;;  %v1105_v27 = vadd.f32 %v2378_v57, %v1066_v23 }
 0x15e   : > { %v1051_v28 = vmul.f32 %v1738_v24, %v2373_v51  ;;  %v1067_v29 = vmul.f32 %v1786_v25, %v2373_v51 }
 0x15f   : > { %v1739_v30 = vpop.f32.mrb[8].mxu0  ;;  %v1787_v31 = vpop.f32.mrb[8].mxu1  ;;  %v1121_v40 = vmax.f32 %v1089_v26, 0.0  ;;  %v1137_v41 = vmax.f32 %v1105_v27, 0.0 }
 0x160   : > { %v1090_v32 = vadd.f32 %v2378_v57, %v1051_v28  ;;  %v1106_v33 = vadd.f32 %v2378_v57, %v1067_v29  ;;  %v1740_v34 = vpop.f32.mrb[9].mxu0  ;;  %v1788_v35 = vpop.f32.mrb[9].mxu1 }
 0x161   : > { %v1741_v36 = vadd.f32 %v1740_v34, %v1739_v30  ;;  %v1789_v37 = vadd.f32 %v1788_v35, %v1787_v31  ;;  %v1742_v38 = vpop.f32.mrb[10].mxu0  ;;  %v1790_v39 = vpop.f32.mrb[10].mxu1 }
 0x162   : > { %v1122_v42 = vmax.f32 %v1090_v32, 0.0  ;;  %v1138_v43 = vmax.f32 %v1106_v33, 0.0  ;;  %v1743_v44 = vpop.f32.mrb[11].mxu0  ;;  %v1791_v45 = vpop.f32.mrb[11].mxu1 }
 0x163   : > { %v1052_v46 = vmul.f32 %v1741_v36, %v2373_v51  ;;  %v1068_v47 = vmul.f32 %v1789_v37, %v2373_v51  ;;  %v1744_v48 = vadd.f32 %v1743_v44, %v1742_v38  ;;  %v1792_v49 = vadd.f32 %v1791_v45, %v1790_v39 }
 0x164   : > { %v1624_v50 = vpack.c.bf16 %v1122_v42, %v1121_v40  ;;  %v1664_v52 = vpack.c.bf16 %v1138_v43, %v1137_v41 }
 0x165   : > { %v1091_v53 = vadd.f32 %v2378_v57, %v1052_v46  ;;  %v1107_v54 = vadd.f32 %v2378_v57, %v1068_v47  ;;  %v1053_v55 = vmul.f32 %v1744_v48, %v2373_v51  ;;  %v1069_v56 = vmul.f32 %v1792_v49, %v2373_v51 }
 0x166   : > { %1696 = vst [vmem:[%s2391_s26 + $0x8] sm:$0xff] %v1624_v50   ;;  %1704 = vst [vmem:[%s2391_s26 + $0x48] sm:$0xff] %v1664_v52  }
 0x167   : > { %v1092_v58 = vadd.f32 %v2378_v57, %v1053_v55  ;;  %v1108_v59 = vadd.f32 %v2378_v57, %v1069_v56  ;;  %v1745_v60 = vpop.f32.mrb[12].mxu0  ;;  %v1793_v61 = vpop.f32.mrb[12].mxu1  ;;  %v1123_v62 = vmax.f32 %v1091_v53, 0.0  ;;  %v1139_v63 = vmax.f32 %v1107_v54, 0.0 }
 0x168   : > { %v1746_v0 = vpop.f32.mrb[13].mxu0  ;;  %v1794_v1 = vpop.f32.mrb[13].mxu1 }
 0x169   : > { %v1124_v2 = vmax.f32 %v1092_v58, 0.0  ;;  %v1140_v3 = vmax.f32 %v1108_v59, 0.0  ;;  %v1747_v4 = vadd.f32 %v1746_v0, %v1745_v60  ;;  %v1795_v5 = vadd.f32 %v1794_v1, %v1793_v61  ;;  %v1748_v6 = vpop.f32.mrb[14].mxu0  ;;  %v1796_v7 = vpop.f32.mrb[14].mxu1 }
 0x16a   : > { %v1749_v8 = vpop.f32.mrb[15].mxu0  ;;  %v1797_v9 = vpop.f32.mrb[15].mxu1 }
 0x16b   : > { %v1629_v10 = vpack.c.bf16 %v1124_v2, %v1123_v62  ;;  %v1669_v11 = vpack.c.bf16 %v1140_v3, %v1139_v63  ;;  %v1054_v12 = vmul.f32 %v1747_v4, %v2373_v51  ;;  %v1070_v13 = vmul.f32 %v1795_v5, %v2373_v51 }
 0x16c   : > { %v1750_v14 = vadd.f32 %v1749_v8, %v1748_v6  ;;  %v1798_v15 = vadd.f32 %v1797_v9, %v1796_v7 }
 0x16d   : > { %1697 = vst [vmem:[%s2391_s26 + $0x10] sm:$0xff] %v1629_v10   ;;  %1705 = vst [vmem:[%s2391_s26 + $0x50] sm:$0xff] %v1669_v11   ;;  %v1093_v16 = vadd.f32 %v2378_v57, %v1054_v12  ;;  %v1109_v17 = vadd.f32 %v2378_v57, %v1070_v13 }
 0x16e   : > { %v1055_v18 = vmul.f32 %v1750_v14, %v2373_v51  ;;  %v1071_v19 = vmul.f32 %v1798_v15, %v2373_v51 }
 0x16f   : > { %v1751_v20 = vpop.f32.mrb[16].mxu0  ;;  %v1799_v21 = vpop.f32.mrb[16].mxu1  ;;  %v1125_v30 = vmax.f32 %v1093_v16, 0.0  ;;  %v1141_v31 = vmax.f32 %v1109_v17, 0.0 }
 0x170   : > { %v1094_v22 = vadd.f32 %v2378_v57, %v1055_v18  ;;  %v1110_v23 = vadd.f32 %v2378_v57, %v1071_v19  ;;  %v1752_v24 = vpop.f32.mrb[17].mxu0  ;;  %v1800_v25 = vpop.f32.mrb[17].mxu1 }
 0x171   : > { %v1753_v26 = vadd.f32 %v1752_v24, %v1751_v20  ;;  %v1801_v27 = vadd.f32 %v1800_v25, %v1799_v21  ;;  %v1754_v28 = vpop.f32.mrb[18].mxu0  ;;  %v1802_v29 = vpop.f32.mrb[18].mxu1 }
 0x172   : > { %v1126_v32 = vmax.f32 %v1094_v22, 0.0  ;;  %v1142_v33 = vmax.f32 %v1110_v23, 0.0  ;;  %v1755_v34 = vpop.f32.mrb[19].mxu0  ;;  %v1803_v35 = vpop.f32.mrb[19].mxu1 }
 0x173   : > { %v1056_v36 = vmul.f32 %v1753_v26, %v2373_v51  ;;  %v1072_v37 = vmul.f32 %v1801_v27, %v2373_v51  ;;  %v1756_v38 = vadd.f32 %v1755_v34, %v1754_v28  ;;  %v1804_v39 = vadd.f32 %v1803_v35, %v1802_v29 }
 0x174   : > { %v1634_v40 = vpack.c.bf16 %v1126_v32, %v1125_v30  ;;  %v1674_v41 = vpack.c.bf16 %v1142_v33, %v1141_v31 }
 0x175   : > { %v1095_v42 = vadd.f32 %v2378_v57, %v1056_v36  ;;  %v1111_v43 = vadd.f32 %v2378_v57, %v1072_v37  ;;  %v1057_v44 = vmul.f32 %v1756_v38, %v2373_v51  ;;  %v1073_v45 = vmul.f32 %v1804_v39, %v2373_v51 }
 0x176   : > { %1698 = vst [vmem:[%s2391_s26 + $0x18] sm:$0xff] %v1634_v40   ;;  %1706 = vst [vmem:[%s2391_s26 + $0x58] sm:$0xff] %v1674_v41  }
 0x177   : > { %v1096_v46 = vadd.f32 %v2378_v57, %v1057_v44  ;;  %v1112_v47 = vadd.f32 %v2378_v57, %v1073_v45  ;;  %v1757_v48 = vpop.f32.mrb[20].mxu0  ;;  %v1805_v49 = vpop.f32.mrb[20].mxu1  ;;  %v1127_v50 = vmax.f32 %v1095_v42, 0.0  ;;  %v1143_v52 = vmax.f32 %v1111_v43, 0.0 }
 0x178   : > { %v1758_v53 = vpop.f32.mrb[21].mxu0  ;;  %v1806_v54 = vpop.f32.mrb[21].mxu1 }
 0x179   : > { %v1128_v55 = vmax.f32 %v1096_v46, 0.0  ;;  %v1144_v56 = vmax.f32 %v1112_v47, 0.0  ;;  %v1759_v58 = vadd.f32 %v1758_v53, %v1757_v48  ;;  %v1807_v59 = vadd.f32 %v1806_v54, %v1805_v49  ;;  %v1760_v60 = vpop.f32.mrb[22].mxu0  ;;  %v1808_v61 = vpop.f32.mrb[22].mxu1 }
 0x17a   : > { %v1761_v62 = vpop.f32.mrb[23].mxu0  ;;  %v1809_v63 = vpop.f32.mrb[23].mxu1 }
 0x17b   : > { %v1639_v0 = vpack.c.bf16 %v1128_v55, %v1127_v50  ;;  %v1679_v1 = vpack.c.bf16 %v1144_v56, %v1143_v52  ;;  %v1058_v2 = vmul.f32 %v1759_v58, %v2373_v51  ;;  %v1074_v3 = vmul.f32 %v1807_v59, %v2373_v51 }
 0x17c   : > { %v1762_v4 = vadd.f32 %v1761_v62, %v1760_v60  ;;  %v1810_v5 = vadd.f32 %v1809_v63, %v1808_v61 }
 0x17d   : > { %1699 = vst [vmem:[%s2391_s26 + $0x20] sm:$0xff] %v1639_v0   ;;  %1707 = vst [vmem:[%s2391_s26 + $0x60] sm:$0xff] %v1679_v1   ;;  %v1097_v6 = vadd.f32 %v2378_v57, %v1058_v2  ;;  %v1113_v7 = vadd.f32 %v2378_v57, %v1074_v3 }
 0x17e   : > { %v1059_v8 = vmul.f32 %v1762_v4, %v2373_v51  ;;  %v1075_v9 = vmul.f32 %v1810_v5, %v2373_v51 }
 0x17f   : > { %v1763_v10 = vpop.f32.mrb[24].mxu0  ;;  %v1811_v11 = vpop.f32.mrb[24].mxu1  ;;  %v1129_v20 = vmax.f32 %v1097_v6, 0.0  ;;  %v1145_v21 = vmax.f32 %v1113_v7, 0.0 }
 0x180   : > { %v1098_v12 = vadd.f32 %v2378_v57, %v1059_v8  ;;  %v1114_v13 = vadd.f32 %v2378_v57, %v1075_v9  ;;  %v1764_v14 = vpop.f32.mrb[25].mxu0  ;;  %v1812_v15 = vpop.f32.mrb[25].mxu1 }
 0x181   : > { %v1765_v16 = vadd.f32 %v1764_v14, %v1763_v10  ;;  %v1813_v17 = vadd.f32 %v1812_v15, %v1811_v11  ;;  %v1766_v18 = vpop.f32.mrb[26].mxu0  ;;  %v1814_v19 = vpop.f32.mrb[26].mxu1 }
 0x182   : > { %v1130_v22 = vmax.f32 %v1098_v12, 0.0  ;;  %v1146_v23 = vmax.f32 %v1114_v13, 0.0  ;;  %v1767_v24 = vpop.f32.mrb[27].mxu0  ;;  %v1815_v25 = vpop.f32.mrb[27].mxu1 }
 0x183   : > { %v1060_v26 = vmul.f32 %v1765_v16, %v2373_v51  ;;  %v1076_v27 = vmul.f32 %v1813_v17, %v2373_v51  ;;  %v1768_v28 = vadd.f32 %v1767_v24, %v1766_v18  ;;  %v1816_v29 = vadd.f32 %v1815_v25, %v1814_v19 }
 0x184   : > { %v1644_v30 = vpack.c.bf16 %v1130_v22, %v1129_v20  ;;  %v1684_v31 = vpack.c.bf16 %v1146_v23, %v1145_v21 }
 0x185   : > { %v1099_v32 = vadd.f32 %v2378_v57, %v1060_v26  ;;  %v1115_v33 = vadd.f32 %v2378_v57, %v1076_v27  ;;  %v1061_v34 = vmul.f32 %v1768_v28, %v2373_v51  ;;  %v1077_v35 = vmul.f32 %v1816_v29, %v2373_v51 }
 0x186   : > { %1700 = vst [vmem:[%s2391_s26 + $0x28] sm:$0xff] %v1644_v30   ;;  %1708 = vst [vmem:[%s2391_s26 + $0x68] sm:$0xff] %v1684_v31  }
 0x187   : > { %v1100_v36 = vadd.f32 %v2378_v57, %v1061_v34  ;;  %v1116_v37 = vadd.f32 %v2378_v57, %v1077_v35  ;;  %v1769_v38 = vpop.f32.mrb[28].mxu0  ;;  %v1817_v39 = vpop.f32.mrb[28].mxu1  ;;  %v1131_v40 = vmax.f32 %v1099_v32, 0.0  ;;  %v1147_v41 = vmax.f32 %v1115_v33, 0.0 }
 0x188   : > { %v1770_v42 = vpop.f32.mrb[29].mxu0  ;;  %v1818_v43 = vpop.f32.mrb[29].mxu1 }
 0x189   : > { %v1132_v44 = vmax.f32 %v1100_v36, 0.0  ;;  %v1148_v45 = vmax.f32 %v1116_v37, 0.0  ;;  %v1771_v46 = vadd.f32 %v1770_v42, %v1769_v38  ;;  %v1819_v47 = vadd.f32 %v1818_v43, %v1817_v39  ;;  %v1772_v48 = vpop.f32.mrb[30].mxu0  ;;  %v1820_v49 = vpop.f32.mrb[30].mxu1 }
 0x18a   : > { %v1773_v50 = vpop.f32.mrb[31].mxu0  ;;  %v1821_v52 = vpop.f32.mrb[31].mxu1 }
 0x18b   : > { %v1649_v53 = vpack.c.bf16 %v1132_v44, %v1131_v40  ;;  %v1689_v54 = vpack.c.bf16 %v1148_v45, %v1147_v41  ;;  %v1062_v55 = vmul.f32 %v1771_v46, %v2373_v51  ;;  %v1078_v56 = vmul.f32 %v1819_v47, %v2373_v51 }
 0x18c   : > { %v1774_v58 = vadd.f32 %v1773_v50, %v1772_v48  ;;  %v1822_v59 = vadd.f32 %v1821_v52, %v1820_v49 }
 0x18d   : > { %1701 = vst [vmem:[%s2391_s26 + $0x30] sm:$0xff] %v1649_v53   ;;  %1709 = vst [vmem:[%s2391_s26 + $0x70] sm:$0xff] %v1689_v54   ;;  %v1101_v60 = vadd.f32 %v2378_v57, %v1062_v55  ;;  %v1117_v61 = vadd.f32 %v2378_v57, %v1078_v56 }
 0x18e   : > { %v1063_v62 = vmul.f32 %v1774_v58, %v2373_v51  ;;  %v1079_v63 = vmul.f32 %v1822_v59, %v2373_v51 }
 0x18f   : > { %v1133_v2 = vmax.f32 %v1101_v60, 0.0  ;;  %v1149_v3 = vmax.f32 %v1117_v61, 0.0 }
 0x190   : > { %v1102_v0 = vadd.f32 %v2378_v57, %v1063_v62  ;;  %v1118_v1 = vadd.f32 %v2378_v57, %v1079_v63 }
 0x192   : > { %v1134_v4 = vmax.f32 %v1102_v0, 0.0  ;;  %v1150_v5 = vmax.f32 %v1118_v1, 0.0 }
 0x194   : > { %v1654_v51 = vpack.c.bf16 %v1134_v4, %v1133_v2  ;;  %v1694_v6 = vpack.c.bf16 %v1150_v5, %v1149_v3 }
 0x196   : > { %1702 = vst [vmem:[%s2391_s26 + $0x38] sm:$0xff] %v1654_v51   ;;  %1710 = vst [vmem:[%s2391_s26 + $0x78] sm:$0xff] %v1694_v6  }
 0x197   : > { %2053 = shalt.err (!%p2050_p5)
}
 0x198   : > { %s2054_s27 = scalar_lea.hbm %s2466_s12, 2048  ;;  %s2058_s20 = scalar_lea.hbm %s2525_s6, 4096 }
 0x199   : > { %p2055_p9 = scmp.ne.s32.totalorder %s2466_s12, %s2054_s27  ;;  %p2059_p3 = scmp.lt.u32.totalorder %s2466_s12, %s2525_s6 }
 0x19a   : > { %p2060_p7 = scmp.lt.u32.totalorder %s2058_s20, %s2054_s27  ;;  %p2062_p4 = scmp.lt.u32.totalorder %s2054_s27, %s2466_s12 }
 0x19b   : > { %p2056_p1 = pnand %p2055_p9, %p2268_p10 }
 0x19c   : > { %p2061_p13 = por %p2060_p7, %p2059_p3 }
 0x19d   : > { %p2057_p2 = pneg %p2056_p1 }
 0x19e   : > { %p2063_p6 = por %p2062_p4, %p2061_p13 }
 0x1a0   : > { %p2064_p8 = pnand %p2063_p6, %p2057_p2 }
 0x1a2   : > { %2067 = shalt.err (!%p2064_p8)
}
 0x1a3   : > { %s2135_s8 = smov 64   ;;  %s2136_s28 = smov 4  }
 0x1a4   : > { %1845 = dma.vmem_to_hbm [thread:$0]  (%p2268_p10), %s2468_s19, 2048, %s2466_s12, %s1312_s3, %s2135_s8, %s2135_s8, %s2136_s28  }
 0x1a5 PF: > { %s1341_s10 = sand.u32 1, %s2106_s21   ;;  %p2543_p12 = scmp.ne.s32.totalorder %s2533_s30, 0 }
 0x1a6   : > { %p2544_p11 = scmp.ge.s32.totalorder %s2126_s24, 2  ;;  %s1342_s15 = scalar_lea.sflag [#allocation5], %s1341_s10 }
 0x1a8   : > { %p1856_p0 = pnand %p2544_p11, %p2543_p12 }
 0x1aa   : > { %2101 = dma.done.wait (!%p1856_p0), %s1342_s15, 2048  }
 0x1ab   : > { %2103 = vsyncadd (!%p1856_p0), %s1342_s15, 4294965248  ;;  %s23_s24 = sadd.s32 1, %s2126_s24   ;;  %s2545_s21 = smov %s2110_s2 }
 0x1ac   : > { %p20_p5 = scmp.ge.s32.totalorder %s23_s24, 4   ;;  %s2546_s2 = smov %s2114_s22 }
 0x1ad   : > { %s2547_s22 = smov %s2277_s16  ;;  %s2548_s3 = smov %s2122_s23 }
 0x1ae   : > { %s2549_s23 = smov %s2551_s11  ;;  %22 = sbr.rel (!%p20_p5) target bundleno = 7 (0x7), region = 114 }
 0x1b5   :  { %1347 = vsyncpa [#allocation4], 1 }
 0x1b6   :  { %1349 = vsyncpa [#allocation4 + $0x1], 1 }
 0x1b7   :  { %1350 = vsyncpa [#allocation7], 1 }
 0x1b8   :  { %1351 = vsyncpa [#allocation5], 1 }
 0x1b9   :  { %1353 = vsyncpa [#allocation5 + $0x1], 1 }

</bundles_post_ra>
